<compile_context>
chip_gen: v7x
topology: tpu7x:2x2x1
jax: 0.10.0
libtpu: 0.0.40
codegen_flags: <defaults>
</compile_context>

<pallas_src>
import jax
import jax.numpy as jnp
from jax import lax
from jax.experimental import pallas as pl
from jax.experimental.pallas import tpu as pltpu

OUT_H, OUT_W = 64, 64


def _make_upsample_kernel(H, W, rep_h, precision, fast):
    """Build the per-tile kernel.

    s_ref: selection matrix (fast: (W, rep_h*OUT_W); fallback: (H*W, OUT_H*OUT_W))
    x_ref: (TM, H*W)   flattened input planes (lane-dense DMA)
    o_ref: (TM, OUT_H*OUT_W)  flattened output planes (lane-dense stores)
    """
    out_cols = rep_h * OUT_W  # output lanes produced per input row (fast path)

    def kernel(s_ref, x_ref, o_ref):
        if fast:
            # Block-diagonal selection: one small matmul per input row.
            for ih in range(H):
                cols = jnp.dot(
                    x_ref[:, ih * W:(ih + 1) * W], s_ref[...],
                    preferred_element_type=jnp.float32,
                    precision=precision,
                )
                o_ref[:, ih * out_cols:(ih + 1) * out_cols] = cols.astype(o_ref.dtype)
        else:
            # General fallback: fused one-hot over the whole plane.
            o_ref[...] = jnp.dot(
                x_ref[...], s_ref[...],
                preferred_element_type=jnp.float32,
                precision=precision,
            ).astype(o_ref.dtype)

    return kernel


def _choose_tm(P):
    tm = 256
    if P <= tm:
        tm = max(8, ((P + 7) // 8) * 8)
        if P >= 16:
            # Keep both v7x TensorCores busy: force >= 2 parallel grid steps.
            tm = max(8, (((P + 1) // 2 + 7) // 8) * 8)
    return tm


def upsample_nearest_64x64(x):
    """x: (N, C, H, W) -> (N, C, 64, 64), nearest interpolation (PyTorch semantics)."""
    N, C, H, W = x.shape
    out_dtype = x.dtype

    # Compute dtype: bf16 stays bf16 (one-hot selection is exact); else f32 with
    # HIGHEST precision so f32 values are not rounded to bf16 by the MXU path.
    # TODO(synk): integer dtypes would need a non-matmul copy path to be exact.
    comp_dtype = jnp.bfloat16 if x.dtype == jnp.bfloat16 else jnp.float32
    precision = None if comp_dtype == jnp.bfloat16 else lax.Precision.HIGHEST

    HW, OHW = H * W, OUT_H * OUT_W
    # PyTorch nearest: src = floor(dst * in / out)
    idx_h = (jnp.arange(OUT_H) * H) // OUT_H
    idx_w = (jnp.arange(OUT_W) * W) // OUT_W

    fast = (OUT_H % H) == 0
    if fast:
        rep_h = OUT_H // H
        col_onehot = jax.nn.one_hot(idx_w, W, dtype=comp_dtype).T       # (W, OUT_W)
        sel = jnp.tile(col_onehot, (1, rep_h))                          # (W, rep_h*OUT_W)
    else:
        rep_h = 1
        idx_flat = (idx_h[:, None] * W + idx_w[None, :]).reshape(-1)    # (OHW,)
        sel = jax.nn.one_hot(idx_flat, HW, dtype=comp_dtype).T          # (HW, OHW)

    P = N * C
    TM = _choose_tm(P)
    grid = (pl.cdiv(P, TM),)

    x_flat = x.reshape(P, HW).astype(comp_dtype)

    out_flat = pl.pallas_call(
        _make_upsample_kernel(H, W, rep_h, precision, fast),
        out_shape=jax.ShapeDtypeStruct((P, OHW), out_dtype),
        grid=grid,
        in_specs=[
            pl.BlockSpec(sel.shape, lambda i: (0, 0)),    # selection matrix, VMEM-resident
            pl.BlockSpec((TM, HW), lambda i: (i, 0)),     # lane-dense input planes
        ],
        out_specs=pl.BlockSpec((TM, OHW), lambda i: (i, 0)),
        compiler_params=pltpu.CompilerParams(
            dimension_semantics=("parallel",)),
    )(sel, x_flat)

    return out_flat.reshape(N, C, OUT_H, OUT_W)


if __name__ == "__main__":
    key = jax.random.PRNGKey(0)
    x = jax.random.normal(key, (2, 4, 16, 16), dtype=jnp.float32)

    y = upsample_nearest_64x64(x)
    jax.block_until_ready(y)

    # Reference: nearest upsample with integer factor 4 == repeat.
    ref = jnp.repeat(jnp.repeat(x, OUT_H // 16, axis=2), OUT_W // 16, axis=3)
    assert y.shape == (2, 4, 64, 64)
    assert jnp.allclose(y, ref), "mismatch vs reference nearest upsample"

    print("KERNEL_OK")
</pallas_src>

<mosaic_0001>
module attributes {stable_mosaic.version = 11 : i64} {
  func.func @kernel(%arg0: i32, %arg1: memref<16x256xf32, #tpu.memory_space<vmem>>, %arg2: memref<8x256xf32, #tpu.memory_space<vmem>>, %arg3: memref<8x4096xf32, #tpu.memory_space<vmem>>) attributes {dimension_semantics = [#tpu.dimension_semantics<parallel>], iteration_bounds = array<i64: 1>, scalar_prefetch = 0 : i64, scratch_operands = 0 : i64, tpu.core_type = #tpu.core_type<tc>, window_params = [{pipeline_mode = #tpu.pipeline_mode<synchronous>, transform_indices = @transform_0, window_bounds = array<i64: 16, 256>}, {transform_indices = @transform_1, window_bounds = array<i64: 8, 256>}, {transform_indices = @transform_2, window_bounds = array<i64: 8, 4096>}]} {
    %c0 = arith.constant 0 : index
    %c0_0 = arith.constant 0 : index
    %0 = vector.load %arg2[%c0, %c0_0] : memref<8x256xf32, #tpu.memory_space<vmem>>, vector<8x16xf32>
    %c0_1 = arith.constant 0 : index
    %c0_2 = arith.constant 0 : index
    %1 = vector.load %arg1[%c0_1, %c0_2] : memref<16x256xf32, #tpu.memory_space<vmem>>, vector<16x256xf32>
    %cst = arith.constant dense<0.000000e+00> : vector<8x256xf32>
    %2 = tpu.matmul %0, %1, %cst {dimension_numbers = #tpu.dot_dimension_numbers<[1], [0], [0], [1], [0, 0, 1, 1], [], []>, precision = #tpu.contract_precision<fp32>} : vector<8x16xf32>, vector<16x256xf32>, vector<8x256xf32> -> vector<8x256xf32>
    %c0_3 = arith.constant 0 : index
    %c0_4 = arith.constant 0 : index
    %3 = vector.load %arg3[%c0_3, %c0_4] : memref<8x4096xf32, #tpu.memory_space<vmem>>, vector<8x256xf32>
    tpu.vector_store %arg3[%c0_3, %c0_4], %2 {strides = array<i32>} : memref<8x4096xf32, #tpu.memory_space<vmem>>, vector<8x256xf32>,
    %c0_5 = arith.constant 0 : index
    %c16 = arith.constant 16 : index
    %4 = vector.load %arg2[%c0_5, %c16] : memref<8x256xf32, #tpu.memory_space<vmem>>, vector<8x16xf32>
    %c0_6 = arith.constant 0 : index
    %c0_7 = arith.constant 0 : index
    %5 = vector.load %arg1[%c0_6, %c0_7] : memref<16x256xf32, #tpu.memory_space<vmem>>, vector<16x256xf32>
    %cst_8 = arith.constant dense<0.000000e+00> : vector<8x256xf32>
    %6 = tpu.matmul %4, %5, %cst_8 {dimension_numbers = #tpu.dot_dimension_numbers<[1], [0], [0], [1], [0, 0, 1, 1], [], []>, precision = #tpu.contract_precision<fp32>} : vector<8x16xf32>, vector<16x256xf32>, vector<8x256xf32> -> vector<8x256xf32>
    %c0_9 = arith.constant 0 : index
    %c256 = arith.constant 256 : index
    %7 = vector.load %arg3[%c0_9, %c256] : memref<8x4096xf32, #tpu.memory_space<vmem>>, vector<8x256xf32>
    tpu.vector_store %arg3[%c0_9, %c256], %6 {strides = array<i32>} : memref<8x4096xf32, #tpu.memory_space<vmem>>, vector<8x256xf32>,
    %c0_10 = arith.constant 0 : index
    %c32 = arith.constant 32 : index
    %8 = vector.load %arg2[%c0_10, %c32] : memref<8x256xf32, #tpu.memory_space<vmem>>, vector<8x16xf32>
    %c0_11 = arith.constant 0 : index
    %c0_12 = arith.constant 0 : index
    %9 = vector.load %arg1[%c0_11, %c0_12] : memref<16x256xf32, #tpu.memory_space<vmem>>, vector<16x256xf32>
    %cst_13 = arith.constant dense<0.000000e+00> : vector<8x256xf32>
    %10 = tpu.matmul %8, %9, %cst_13 {dimension_numbers = #tpu.dot_dimension_numbers<[1], [0], [0], [1], [0, 0, 1, 1], [], []>, precision = #tpu.contract_precision<fp32>} : vector<8x16xf32>, vector<16x256xf32>, vector<8x256xf32> -> vector<8x256xf32>
    %c0_14 = arith.constant 0 : index
    %c512 = arith.constant 512 : index
    %11 = vector.load %arg3[%c0_14, %c512] : memref<8x4096xf32, #tpu.memory_space<vmem>>, vector<8x256xf32>
    tpu.vector_store %arg3[%c0_14, %c512], %10 {strides = array<i32>} : memref<8x4096xf32, #tpu.memory_space<vmem>>, vector<8x256xf32>,
    %c0_15 = arith.constant 0 : index
    %c48 = arith.constant 48 : index
    %12 = vector.load %arg2[%c0_15, %c48] : memref<8x256xf32, #tpu.memory_space<vmem>>, vector<8x16xf32>
    %c0_16 = arith.constant 0 : index
    %c0_17 = arith.constant 0 : index
    %13 = vector.load %arg1[%c0_16, %c0_17] : memref<16x256xf32, #tpu.memory_space<vmem>>, vector<16x256xf32>
    %cst_18 = arith.constant dense<0.000000e+00> : vector<8x256xf32>
    %14 = tpu.matmul %12, %13, %cst_18 {dimension_numbers = #tpu.dot_dimension_numbers<[1], [0], [0], [1], [0, 0, 1, 1], [], []>, precision = #tpu.contract_precision<fp32>} : vector<8x16xf32>, vector<16x256xf32>, vector<8x256xf32> -> vector<8x256xf32>
    %c0_19 = arith.constant 0 : index
    %c768 = arith.constant 768 : index
    %15 = vector.load %arg3[%c0_19, %c768] : memref<8x4096xf32, #tpu.memory_space<vmem>>, vector<8x256xf32>
    tpu.vector_store %arg3[%c0_19, %c768], %14 {strides = array<i32>} : memref<8x4096xf32, #tpu.memory_space<vmem>>, vector<8x256xf32>,
    %c0_20 = arith.constant 0 : index
    %c64 = arith.constant 64 : index
    %16 = vector.load %arg2[%c0_20, %c64] : memref<8x256xf32, #tpu.memory_space<vmem>>, vector<8x16xf32>
    %c0_21 = arith.constant 0 : index
    %c0_22 = arith.constant 0 : index
    %17 = vector.load %arg1[%c0_21, %c0_22] : memref<16x256xf32, #tpu.memory_space<vmem>>, vector<16x256xf32>
    %cst_23 = arith.constant dense<0.000000e+00> : vector<8x256xf32>
    %18 = tpu.matmul %16, %17, %cst_23 {dimension_numbers = #tpu.dot_dimension_numbers<[1], [0], [0], [1], [0, 0, 1, 1], [], []>, precision = #tpu.contract_precision<fp32>} : vector<8x16xf32>, vector<16x256xf32>, vector<8x256xf32> -> vector<8x256xf32>
    %c0_24 = arith.constant 0 : index
    %c1024 = arith.constant 1024 : index
    %19 = vector.load %arg3[%c0_24, %c1024] : memref<8x4096xf32, #tpu.memory_space<vmem>>, vector<8x256xf32>
    tpu.vector_store %arg3[%c0_24, %c1024], %18 {strides = array<i32>} : memref<8x4096xf32, #tpu.memory_space<vmem>>, vector<8x256xf32>,
    %c0_25 = arith.constant 0 : index
    %c80 = arith.constant 80 : index
    %20 = vector.load %arg2[%c0_25, %c80] : memref<8x256xf32, #tpu.memory_space<vmem>>, vector<8x16xf32>
    %c0_26 = arith.constant 0 : index
    %c0_27 = arith.constant 0 : index
    %21 = vector.load %arg1[%c0_26, %c0_27] : memref<16x256xf32, #tpu.memory_space<vmem>>, vector<16x256xf32>
    %cst_28 = arith.constant dense<0.000000e+00> : vector<8x256xf32>
    %22 = tpu.matmul %20, %21, %cst_28 {dimension_numbers = #tpu.dot_dimension_numbers<[1], [0], [0], [1], [0, 0, 1, 1], [], []>, precision = #tpu.contract_precision<fp32>} : vector<8x16xf32>, vector<16x256xf32>, vector<8x256xf32> -> vector<8x256xf32>
    %c0_29 = arith.constant 0 : index
    %c1280 = arith.constant 1280 : index
    %23 = vector.load %arg3[%c0_29, %c1280] : memref<8x4096xf32, #tpu.memory_space<vmem>>, vector<8x256xf32>
    tpu.vector_store %arg3[%c0_29, %c1280], %22 {strides = array<i32>} : memref<8x4096xf32, #tpu.memory_space<vmem>>, vector<8x256xf32>,
    %c0_30 = arith.constant 0 : index
    %c96 = arith.constant 96 : index
    %24 = vector.load %arg2[%c0_30, %c96] : memref<8x256xf32, #tpu.memory_space<vmem>>, vector<8x16xf32>
    %c0_31 = arith.constant 0 : index
    %c0_32 = arith.constant 0 : index
    %25 = vector.load %arg1[%c0_31, %c0_32] : memref<16x256xf32, #tpu.memory_space<vmem>>, vector<16x256xf32>
    %cst_33 = arith.constant dense<0.000000e+00> : vector<8x256xf32>
    %26 = tpu.matmul %24, %25, %cst_33 {dimension_numbers = #tpu.dot_dimension_numbers<[1], [0], [0], [1], [0, 0, 1, 1], [], []>, precision = #tpu.contract_precision<fp32>} : vector<8x16xf32>, vector<16x256xf32>, vector<8x256xf32> -> vector<8x256xf32>
    %c0_34 = arith.constant 0 : index
    %c1536 = arith.constant 1536 : index
    %27 = vector.load %arg3[%c0_34, %c1536] : memref<8x4096xf32, #tpu.memory_space<vmem>>, vector<8x256xf32>
    tpu.vector_store %arg3[%c0_34, %c1536], %26 {strides = array<i32>} : memref<8x4096xf32, #tpu.memory_space<vmem>>, vector<8x256xf32>,
    %c0_35 = arith.constant 0 : index
    %c112 = arith.constant 112 : index
    %28 = vector.load %arg2[%c0_35, %c112] : memref<8x256xf32, #tpu.memory_space<vmem>>, vector<8x16xf32>
    %c0_36 = arith.constant 0 : index
    %c0_37 = arith.constant 0 : index
    %29 = vector.load %arg1[%c0_36, %c0_37] : memref<16x256xf32, #tpu.memory_space<vmem>>, vector<16x256xf32>
    %cst_38 = arith.constant dense<0.000000e+00> : vector<8x256xf32>
    %30 = tpu.matmul %28, %29, %cst_38 {dimension_numbers = #tpu.dot_dimension_numbers<[1], [0], [0], [1], [0, 0, 1, 1], [], []>, precision = #tpu.contract_precision<fp32>} : vector<8x16xf32>, vector<16x256xf32>, vector<8x256xf32> -> vector<8x256xf32>
    %c0_39 = arith.constant 0 : index
    %c1792 = arith.constant 1792 : index
    %31 = vector.load %arg3[%c0_39, %c1792] : memref<8x4096xf32, #tpu.memory_space<vmem>>, vector<8x256xf32>
    tpu.vector_store %arg3[%c0_39, %c1792], %30 {strides = array<i32>} : memref<8x4096xf32, #tpu.memory_space<vmem>>, vector<8x256xf32>,
    %c0_40 = arith.constant 0 : index
    %c128 = arith.constant 128 : index
    %32 = vector.load %arg2[%c0_40, %c128] : memref<8x256xf32, #tpu.memory_space<vmem>>, vector<8x16xf32>
    %c0_41 = arith.constant 0 : index
    %c0_42 = arith.constant 0 : index
    %33 = vector.load %arg1[%c0_41, %c0_42] : memref<16x256xf32, #tpu.memory_space<vmem>>, vector<16x256xf32>
    %cst_43 = arith.constant dense<0.000000e+00> : vector<8x256xf32>
    %34 = tpu.matmul %32, %33, %cst_43 {dimension_numbers = #tpu.dot_dimension_numbers<[1], [0], [0], [1], [0, 0, 1, 1], [], []>, precision = #tpu.contract_precision<fp32>} : vector<8x16xf32>, vector<16x256xf32>, vector<8x256xf32> -> vector<8x256xf32>
    %c0_44 = arith.constant 0 : index
    %c2048 = arith.constant 2048 : index
    %35 = vector.load %arg3[%c0_44, %c2048] : memref<8x4096xf32, #tpu.memory_space<vmem>>, vector<8x256xf32>
    tpu.vector_store %arg3[%c0_44, %c2048], %34 {strides = array<i32>} : memref<8x4096xf32, #tpu.memory_space<vmem>>, vector<8x256xf32>,
    %c0_45 = arith.constant 0 : index
    %c144 = arith.constant 144 : index
    %36 = vector.load %arg2[%c0_45, %c144] : memref<8x256xf32, #tpu.memory_space<vmem>>, vector<8x16xf32>
    %c0_46 = arith.constant 0 : index
    %c0_47 = arith.constant 0 : index
    %37 = vector.load %arg1[%c0_46, %c0_47] : memref<16x256xf32, #tpu.memory_space<vmem>>, vector<16x256xf32>
    %cst_48 = arith.constant dense<0.000000e+00> : vector<8x256xf32>
    %38 = tpu.matmul %36, %37, %cst_48 {dimension_numbers = #tpu.dot_dimension_numbers<[1], [0], [0], [1], [0, 0, 1, 1], [], []>, precision = #tpu.contract_precision<fp32>} : vector<8x16xf32>, vector<16x256xf32>, vector<8x256xf32> -> vector<8x256xf32>
    %c0_49 = arith.constant 0 : index
    %c2304 = arith.constant 2304 : index
    %39 = vector.load %arg3[%c0_49, %c2304] : memref<8x4096xf32, #tpu.memory_space<vmem>>, vector<8x256xf32>
    tpu.vector_store %arg3[%c0_49, %c2304], %38 {strides = array<i32>} : memref<8x4096xf32, #tpu.memory_space<vmem>>, vector<8x256xf32>,
    %c0_50 = arith.constant 0 : index
    %c160 = arith.constant 160 : index
    %40 = vector.load %arg2[%c0_50, %c160] : memref<8x256xf32, #tpu.memory_space<vmem>>, vector<8x16xf32>
    %c0_51 = arith.constant 0 : index
    %c0_52 = arith.constant 0 : index
    %41 = vector.load %arg1[%c0_51, %c0_52] : memref<16x256xf32, #tpu.memory_space<vmem>>, vector<16x256xf32>
    %cst_53 = arith.constant dense<0.000000e+00> : vector<8x256xf32>
    %42 = tpu.matmul %40, %41, %cst_53 {dimension_numbers = #tpu.dot_dimension_numbers<[1], [0], [0], [1], [0, 0, 1, 1], [], []>, precision = #tpu.contract_precision<fp32>} : vector<8x16xf32>, vector<16x256xf32>, vector<8x256xf32> -> vector<8x256xf32>
    %c0_54 = arith.constant 0 : index
    %c2560 = arith.constant 2560 : index
    %43 = vector.load %arg3[%c0_54, %c2560] : memref<8x4096xf32, #tpu.memory_space<vmem>>, vector<8x256xf32>
    tpu.vector_store %arg3[%c0_54, %c2560], %42 {strides = array<i32>} : memref<8x4096xf32, #tpu.memory_space<vmem>>, vector<8x256xf32>,
    %c0_55 = arith.constant 0 : index
    %c176 = arith.constant 176 : index
    %44 = vector.load %arg2[%c0_55, %c176] : memref<8x256xf32, #tpu.memory_space<vmem>>, vector<8x16xf32>
    %c0_56 = arith.constant 0 : index
    %c0_57 = arith.constant 0 : index
    %45 = vector.load %arg1[%c0_56, %c0_57] : memref<16x256xf32, #tpu.memory_space<vmem>>, vector<16x256xf32>
    %cst_58 = arith.constant dense<0.000000e+00> : vector<8x256xf32>
    %46 = tpu.matmul %44, %45, %cst_58 {dimension_numbers = #tpu.dot_dimension_numbers<[1], [0], [0], [1], [0, 0, 1, 1], [], []>, precision = #tpu.contract_precision<fp32>} : vector<8x16xf32>, vector<16x256xf32>, vector<8x256xf32> -> vector<8x256xf32>
    %c0_59 = arith.constant 0 : index
    %c2816 = arith.constant 2816 : index
    %47 = vector.load %arg3[%c0_59, %c2816] : memref<8x4096xf32, #tpu.memory_space<vmem>>, vector<8x256xf32>
    tpu.vector_store %arg3[%c0_59, %c2816], %46 {strides = array<i32>} : memref<8x4096xf32, #tpu.memory_space<vmem>>, vector<8x256xf32>,
    %c0_60 = arith.constant 0 : index
    %c192 = arith.constant 192 : index
    %48 = vector.load %arg2[%c0_60, %c192] : memref<8x256xf32, #tpu.memory_space<vmem>>, vector<8x16xf32>
    %c0_61 = arith.constant 0 : index
    %c0_62 = arith.constant 0 : index
    %49 = vector.load %arg1[%c0_61, %c0_62] : memref<16x256xf32, #tpu.memory_space<vmem>>, vector<16x256xf32>
    %cst_63 = arith.constant dense<0.000000e+00> : vector<8x256xf32>
    %50 = tpu.matmul %48, %49, %cst_63 {dimension_numbers = #tpu.dot_dimension_numbers<[1], [0], [0], [1], [0, 0, 1, 1], [], []>, precision = #tpu.contract_precision<fp32>} : vector<8x16xf32>, vector<16x256xf32>, vector<8x256xf32> -> vector<8x256xf32>
    %c0_64 = arith.constant 0 : index
    %c3072 = arith.constant 3072 : index
    %51 = vector.load %arg3[%c0_64, %c3072] : memref<8x4096xf32, #tpu.memory_space<vmem>>, vector<8x256xf32>
    tpu.vector_store %arg3[%c0_64, %c3072], %50 {strides = array<i32>} : memref<8x4096xf32, #tpu.memory_space<vmem>>, vector<8x256xf32>,
    %c0_65 = arith.constant 0 : index
    %c208 = arith.constant 208 : index
    %52 = vector.load %arg2[%c0_65, %c208] : memref<8x256xf32, #tpu.memory_space<vmem>>, vector<8x16xf32>
    %c0_66 = arith.constant 0 : index
    %c0_67 = arith.constant 0 : index
    %53 = vector.load %arg1[%c0_66, %c0_67] : memref<16x256xf32, #tpu.memory_space<vmem>>, vector<16x256xf32>
    %cst_68 = arith.constant dense<0.000000e+00> : vector<8x256xf32>
    %54 = tpu.matmul %52, %53, %cst_68 {dimension_numbers = #tpu.dot_dimension_numbers<[1], [0], [0], [1], [0, 0, 1, 1], [], []>, precision = #tpu.contract_precision<fp32>} : vector<8x16xf32>, vector<16x256xf32>, vector<8x256xf32> -> vector<8x256xf32>
    %c0_69 = arith.constant 0 : index
    %c3328 = arith.constant 3328 : index
    %55 = vector.load %arg3[%c0_69, %c3328] : memref<8x4096xf32, #tpu.memory_space<vmem>>, vector<8x256xf32>
    tpu.vector_store %arg3[%c0_69, %c3328], %54 {strides = array<i32>} : memref<8x4096xf32, #tpu.memory_space<vmem>>, vector<8x256xf32>,
    %c0_70 = arith.constant 0 : index
    %c224 = arith.constant 224 : index
    %56 = vector.load %arg2[%c0_70, %c224] : memref<8x256xf32, #tpu.memory_space<vmem>>, vector<8x16xf32>
    %c0_71 = arith.constant 0 : index
    %c0_72 = arith.constant 0 : index
    %57 = vector.load %arg1[%c0_71, %c0_72] : memref<16x256xf32, #tpu.memory_space<vmem>>, vector<16x256xf32>
    %cst_73 = arith.constant dense<0.000000e+00> : vector<8x256xf32>
    %58 = tpu.matmul %56, %57, %cst_73 {dimension_numbers = #tpu.dot_dimension_numbers<[1], [0], [0], [1], [0, 0, 1, 1], [], []>, precision = #tpu.contract_precision<fp32>} : vector<8x16xf32>, vector<16x256xf32>, vector<8x256xf32> -> vector<8x256xf32>
    %c0_74 = arith.constant 0 : index
    %c3584 = arith.constant 3584 : index
    %59 = vector.load %arg3[%c0_74, %c3584] : memref<8x4096xf32, #tpu.memory_space<vmem>>, vector<8x256xf32>
    tpu.vector_store %arg3[%c0_74, %c3584], %58 {strides = array<i32>} : memref<8x4096xf32, #tpu.memory_space<vmem>>, vector<8x256xf32>,
    %c0_75 = arith.constant 0 : index
    %c240 = arith.constant 240 : index
    %60 = vector.load %arg2[%c0_75, %c240] : memref<8x256xf32, #tpu.memory_space<vmem>>, vector<8x16xf32>
    %c0_76 = arith.constant 0 : index
    %c0_77 = arith.constant 0 : index
    %61 = vector.load %arg1[%c0_76, %c0_77] : memref<16x256xf32, #tpu.memory_space<vmem>>, vector<16x256xf32>
    %cst_78 = arith.constant dense<0.000000e+00> : vector<8x256xf32>
    %62 = tpu.matmul %60, %61, %cst_78 {dimension_numbers = #tpu.dot_dimension_numbers<[1], [0], [0], [1], [0, 0, 1, 1], [], []>, precision = #tpu.contract_precision<fp32>} : vector<8x16xf32>, vector<16x256xf32>, vector<8x256xf32> -> vector<8x256xf32>
    %c0_79 = arith.constant 0 : index
    %c3840 = arith.constant 3840 : index
    %63 = vector.load %arg3[%c0_79, %c3840] : memref<8x4096xf32, #tpu.memory_space<vmem>>, vector<8x256xf32>
    tpu.vector_store %arg3[%c0_79, %c3840], %62 {strides = array<i32>} : memref<8x4096xf32, #tpu.memory_space<vmem>>, vector<8x256xf32>,
    return
  }
  func.func @transform_0(%arg0: i32) -> (i32, i32) {
    %c0_i32 = arith.constant 0 : i32
    %c0_i32_0 = arith.constant 0 : i32
    %c0_i32_1 = arith.constant 0 : i32
    return %c0_i32, %c0_i32_0 : i32, i32
  }
  func.func @transform_1(%arg0: i32) -> (i32, i32) {
    %c0_i32 = arith.constant 0 : i32
    %c0_i32_0 = arith.constant 0 : i32
    return %arg0, %c0_i32 : i32, i32
  }
  func.func @transform_2(%arg0: i32) -> (i32, i32) {
    %c0_i32 = arith.constant 0 : i32
    %c0_i32_0 = arith.constant 0 : i32
    return %arg0, %c0_i32 : i32, i32
  }
}

</mosaic_0001>

<bundles_post_ra>
// kernel: tpu_custom_call.1
= control target key start
LH: loop header
LB: loop body
LE: loop exit
PB: predicated region body
PF: predicated region fallthrough
CT: control target
= control target key end

     0   :  { %7 = vsyncpa [#allocation3], 0  ;;  %s9293_s0 = inlined_call_operand.hbm [shape: f32[16,256], index: 0, kind: input, shape index: {}]   ;;  %s9294_s1 = inlined_call_operand.hbm [shape: f32[8,256], index: 1, kind: input, shape index: {}]   ;;  %s9295_s2 = inlined_call_operand.hbm [shape: f32[8,4096], index: 2, kind: output, shape index: {}]  }
   0x1   :  { %8 = vsyncpa [#allocation6], 0 }
   0x2   :  { %9 = vsyncpa [#allocation4], 0  ;;  %s8727_s9 = smov [#allocation2]   ;;  %s8655_s13 = scalar_lea.hbm %s9293_s0, 512 }
   0x3   :  { %s15_s10 = sshll.u32 %s8727_s9, 4  ;;  %p8656_p0 = scmp.ne.s32.totalorder %s9293_s0, %s8655_s13  ;;  %s16_s10 = int_to_ptr.vmem [resolvable:$true] %s15_s10 }
   0x4   :  { %p8659_p1 = scmp.lt.u32.totalorder %s8655_s13, %s9293_s0 }
   0x6   :  { %p8661_p2 = pnand %p8659_p1, %p8656_p0 }
   0x8   :  { %8664 = shalt.err (!%p8661_p2)
}
   0x9   :  { %s8665_s18 = scalar_lea.vmem %s16_s10, 512  ;;  %p8670_p4 = scmp.lt.s32.totalorder %s16_s10, %s16_s10 }
   0xa   :  { %p8666_p3 = scmp.ne.s32.totalorder %s16_s10, %s8665_s18  ;;  %p8671_p5 = scmp.lt.s32.totalorder %s8665_s18, %s8665_s18 }
   0xc   :  { %p8672_p6 = por %p8671_p5, %p8670_p4 }
   0xe   :  { %p8673_p7 = pnand %p8672_p6, %p8666_p3 }
  0x10   :  { %8676 = shalt.err (!%p8673_p7)
}
  0x11   :  { %s8728_s19 = smov 256   ;;  %s8729_s20 = smov 16  }
  0x12   :  { %21 = dma.hbm_to_vmem [thread:$0]  %s9293_s0, 512, %s16_s10, [#allocation3], %s8728_s19, %s8728_s19, %s8729_s20  }
  0x13   :  { %s8730_s23 = smov [#allocation5]   ;;  %s8677_s27 = scalar_lea.hbm %s9294_s1, 256 }
  0x14   :  { %s28_s24 = sshll.u32 %s8730_s23, 4  ;;  %p8678_p8 = scmp.ne.s32.totalorder %s9294_s1, %s8677_s27  ;;  %s29_s24 = int_to_ptr.vmem [resolvable:$true] %s28_s24 }
  0x15   :  { %p8681_p9 = scmp.lt.u32.totalorder %s8677_s27, %s9294_s1 }
  0x17   :  { %p8683_p10 = pnand %p8681_p9, %p8678_p8 }
  0x19   :  { %8686 = shalt.err (!%p8683_p10)
}
  0x1a   :  { %s8687_s4 = scalar_lea.vmem %s29_s24, 256  ;;  %p8692_p12 = scmp.lt.s32.totalorder %s29_s24, %s29_s24 }
  0x1b   :  { %p8688_p11 = scmp.ne.s32.totalorder %s29_s24, %s8687_s4  ;;  %p8693_p13 = scmp.lt.s32.totalorder %s8687_s4, %s8687_s4 }
  0x1d   :  { %p8694_p0 = por %p8693_p13, %p8692_p12 }
  0x1f   :  { %p8695_p1 = pnand %p8694_p0, %p8688_p11 }
  0x21   :  { %8698 = shalt.err (!%p8695_p1)
}
  0x22   :  { %31 = dma.hbm_to_vmem [thread:$0]  %s9294_s1, 256, %s29_s24, [#allocation6]  }
  0x23   :  { %8721 = dma.done.wait [#allocation3], 512  }
  0x24   :  { %8722 = vsyncadd [#allocation3], 4294966784 }
  0x25   :  { %8723 = dma.done.wait [#allocation6], 256  }
  0x26   :  { %8724 = vsyncadd [#allocation6], 4294967040  ;;  %v8731_v0 = vmov 0.0   ;;  %vm43_vm0 = vcmask 130048   ;;  %v540_v1 = vld [vmem:[#allocation5] sm:$0xff]  ;;  %v40_v2 = vld [vmem:[#allocation2 + $0x8] sm:$0xff] }
  0x27   :  { %115 = vmatprep.mubr.f32.mxu0 %v8731_v0  ;;  %618 = vmatprep.mubr.f32.mxu1 %v8731_v0  ;;  %v42_v3 = vld [vmem:[#allocation2 + $0x18] sm:$0xff]  ;;  %s8732_s6 = smov 112   ;;  %s8733_s7 = smov 80   ;;  %v47_v4 = vand.u32 4294901760, %v40_v2  ;;  %v39_v6 = vld [vmem:[#allocation2] sm:$0xff]  ;;  %v41_v7 = vld [vmem:[#allocation2 + $0x10] sm:$0xff] }
  0x28   :  { %546 = vrot.lane.b32.xlu0 %v540_v1, %s8732_s6  ;;  %1552 = vrot.lane.b32.xlu1 %v540_v1, %s8733_s7  ;;  %v51_v5 = vand.u32 4294901760, %v42_v3  ;;  %v45_v8 = vsel %vm43_vm0, %v540_v1, 0  ;;  %v49_v9 = vand.u32 4294901760, %v39_v6  ;;  %v53_v10 = vand.u32 4294901760, %v41_v7  ;;  %s8734_s1 = smov 96   ;;  %s8735_s8 = smov 64  }
  0x29   :  { %v8784_v11 = vand.u32 4294901760, %v45_v8  ;;  %v128_v13 = vsub.f32 %v40_v2, %v47_v4  ;;  %s8736_s9 = smov 48   ;;  %s8737_s10 = smov 32   ;;  %v8828_v40 = vld [vmem:[#allocation5 + $0x8] sm:$0xff] }
  0x2a   :  { %v8786_v12 = vpack.c.bf16 %v51_v5, %v47_v4  ;;  %v140_v14 = vsub.f32 %v42_v3, %v51_v5  ;;  %v8788_v15 = vpack.c.bf16 %v53_v10, %v49_v9  ;;  %v134_v16 = vsub.f32 %v39_v6, %v49_v9  ;;  %s8738_s11 = smov [#allocation7]  }
  0x2b   :  { %v146_v17 = vsub.f32 %v41_v7, %v53_v10  ;;  %v117_v18 = vsub.f32 %v45_v8, %v8784_v11  ;;  %v129_v19 = vand.u32 4294901760, %v128_v13  ;;  %s8089_s12 = sshll.u32 %s8738_s11, 4  ;;  %s8090_s12 = int_to_ptr.vmem [resolvable:$true] %s8089_s12 }
  0x2c   :  { %1049 = vrot.lane.b32.xlu0 %v540_v1, %s8734_s1  ;;  %2055 = vrot.lane.b32.xlu1 %v540_v1, %s8735_s8  ;;  %v141_v20 = vand.u32 4294901760, %v140_v14  ;;  %v135_v22 = vand.u32 4294901760, %v134_v16  ;;  %v8801_v35 = vpack.c.bf16 %v140_v14, %v128_v13  ;;  %s8699_s13 = scalar_lea.vmem %s8090_s12, 4096  ;;  %p8704_p3 = scmp.lt.s32.totalorder %s8090_s12, %s8090_s12 }
  0x2d   :  { %8100 = vmatprep.subr.bf16.mxu0 %v8786_v12  ;;  %v118_v21 = vand.u32 4294901760, %v117_v18  ;;  %v147_v23 = vand.u32 4294901760, %v146_v17  ;;  %8124 = vmatprep.subr.bf16.mxu1 %v8786_v12  ;;  %v130_v24 = vsub.f32 %v128_v13, %v129_v19  ;;  %v8811_v37 = vpack.c.bf16 %v146_v17, %v134_v16  ;;  %p8700_p2 = scmp.ne.s32.totalorder %s8090_s12, %s8699_s13  ;;  %p8705_p4 = scmp.lt.s32.totalorder %s8699_s13, %s8699_s13 }
  0x2e   :  { %8102 = vmatpush1.bf16.msra.mxu0 %v8788_v15  ;;  %v142_v25 = vsub.f32 %v140_v14, %v141_v20  ;;  %8126 = vmatpush1.bf16.msra.mxu1 %v8788_v15  ;;  %v136_v27 = vsub.f32 %v134_v16, %v135_v22  ;;  %v8817_v38 = vpack.c.bf16 %v141_v20, %v129_v19 }
  0x2f   :  { %v119_v26 = vsub.f32 %v117_v18, %v118_v21  ;;  %v148_v28 = vsub.f32 %v146_v17, %v147_v23  ;;  %v131_v29 = vand.u32 4294901760, %v130_v24  ;;  %v8822_v39 = vpack.c.bf16 %v147_v23, %v135_v22  ;;  %p8706_p5 = por %p8705_p4, %p8704_p3 }
  0x30   :  { %2558 = vrot.lane.b32.xlu0 %v540_v1, %s8736_s9  ;;  %v143_v30 = vand.u32 4294901760, %v142_v25  ;;  %3061 = vrot.lane.b32.xlu1 %v540_v1, %s8737_s10  ;;  %v137_v32 = vand.u32 4294901760, %v136_v27  ;;  %v4067_v24 = vsel %vm43_vm0, %v8828_v40, 0 }
  0x31   :  { %v120_v31 = vand.u32 4294901760, %v119_v26  ;;  %v149_v33 = vand.u32 4294901760, %v148_v28  ;;  %v8987_v26 = vand.u32 4294901760, %v4067_v24  ;;  %p8707_p6 = pnand %p8706_p5, %p8700_p2 }
  0x32   :  { %v8799_v34 = vpack.c.bf16 %v143_v30, %v131_v29 }
  0x33   :  { %121 = vmatmul.mubr.f32.vlgmr.msra.gmra.mrb[0].mxu0 %v120_v31  ;;  %v8803_v36 = vpack.c.bf16 %v149_v33, %v137_v32  ;;  %v8997_v28 = vsub.f32 %v4067_v24, %v8987_v26 }
  0x34   :  { %8104 = vmatprep.subr.bf16.mxu0 %v8799_v34  ;;  %211 = vmatprep.mubr.f32.mxu0 %v8731_v0 }
  0x35   :  { %8106 = vmatpush1.bf16.msra.mxu0 %v8803_v36  ;;  %8128 = vmatprep.subr.bf16.mxu1 %v8799_v34  ;;  %v4140_v30 = vand.u32 4294901760, %v8997_v28 }
  0x36   :  { %8108 = vmatprep.subr.bf16.mxu0 %v8801_v35  ;;  %3564 = vrot.lane.b32.xlu0 %v540_v1, %s8729_s20 }
  0x37   :  { %4568 = vrot.lane.b32.xlu1 %v8828_v40, %s8732_s6  ;;  %v4141_v32 = vsub.f32 %v8997_v28, %v4140_v30 }
  0x3a   :  { %5071 = vrot.lane.b32.xlu0 %v8828_v40, %s8734_s1 }
  0x3b   :  { %213 = vmatmul.mubr.f32.vlgmr.msra.gmra.mrb[0].mxu0 %v8784_v11  ;;  %5574 = vrot.lane.b32.xlu1 %v8828_v40, %s8733_s7 }
  0x3c   :  { %8110 = vmatpush1.bf16.msra.mxu0 %v8811_v37  ;;  %291 = vmatprep.mubr.f32.mxu0 %v8731_v0 }
  0x3d   :  { %8112 = vmatprep.subr.bf16.mxu0 %v8786_v12 }
  0x3e   :  { %6077 = vrot.lane.b32.xlu0 %v8828_v40, %s8735_s8 }
  0x3f   :  { %6580 = vrot.lane.b32.xlu1 %v8828_v40, %s8736_s9 }
  0x42   :  { %7083 = vrot.lane.b32.xlu0 %v8828_v40, %s8737_s10 }
  0x43   :  { %294 = vmatmul.mubr.f32.vlgmr.msra.gmra.mrb[0].mxu0 %v117_v18  ;;  %7586 = vrot.lane.b32.xlu1 %v8828_v40, %s8729_s20  ;;  %v4142_v40 = vand.u32 4294901760, %v4141_v32 }
  0x44   :  { %8114 = vmatpush1.bf16.msra.mxu0 %v8788_v15  ;;  %368 = vmatprep.mubr.f32.mxu0 %v8731_v0 }
  0x45   :  { %8116 = vmatprep.subr.bf16.mxu0 %v8817_v38 }
  0x4b   :  { %372 = vmatmul.mubr.f32.vlgmr.msra.gmra.mrb[0].mxu0 %v118_v21 }
  0x4c   :  { %8118 = vmatpush1.bf16.msra.mxu0 %v8822_v39  ;;  %454 = vmatprep.mubr.f32.mxu0 %v8731_v0 }
  0x4d   :  { %8120 = vmatprep.subr.bf16.mxu0 %v8786_v12 }
  0x53   :  { %456 = vmatmul.mubr.f32.vlgmr.msra.gmra.mrb[0].mxu0 %v8784_v11 }
  0x54   :  { %8122 = vmatpush1.bf16.msra.mxu0 %v8788_v15  ;;  %530 = vmatprep.mubr.f32.mxu0 %v8731_v0 }
  0x55   :  { %8148 = vmatprep.subr.bf16.mxu0 %v8786_v12 }
  0x5b   :  { %532 = vmatmul.mubr.f32.vlgmr.msra.gmra.mrb[0].mxu0 %v8784_v11 }
  0x5c   :  { %8150 = vmatpush1.bf16.msra.mxu0 %v8788_v15  ;;  %1121 = vmatprep.mubr.f32.mxu0 %v8731_v0 }
  0x5d   :  { %8152 = vmatprep.subr.bf16.mxu0 %v8799_v34 }
  0x9a   :  { %v547_v41 = vpop.permute.xlu0 %546  ;;  %v1553_v55 = vpop.permute.xlu1 %1552 }
  0x9b   :  { %v548_v42 = vsel %vm43_vm0, %v547_v41, 0  ;;  %v1554_v57 = vsel %vm43_vm0, %v1553_v55, 0 }
  0x9c   :  { %v8852_v43 = vand.u32 4294901760, %v548_v42  ;;  %v8883_v59 = vand.u32 4294901760, %v1554_v57 }
  0x9e   :  { %v620_v44 = vsub.f32 %v548_v42, %v8852_v43  ;;  %v1050_v45 = vpop.permute.xlu0 %1049  ;;  %v2056_v56 = vpop.permute.xlu1 %2055  ;;  %v1626_v61 = vsub.f32 %v1554_v57, %v8883_v59 }
  0x9f   :  { %v1051_v46 = vsel %vm43_vm0, %v1050_v45, 0  ;;  %v2057_v58 = vsel %vm43_vm0, %v2056_v56, 0  ;;  %v4565_v45 = vld [vmem:[#allocation2 + $0x10] sm:$0xff] }
  0xa0   :  { %v621_v47 = vand.u32 4294901760, %v620_v44  ;;  %v8856_v48 = vand.u32 4294901760, %v1051_v46  ;;  %v8886_v60 = vand.u32 4294901760, %v2057_v58  ;;  %v1627_v63 = vand.u32 4294901760, %v1626_v61 }
  0xa2   :  { %v1123_v49 = vsub.f32 %v1051_v46, %v8856_v48  ;;  %v622_v50 = vsub.f32 %v620_v44, %v621_v47  ;;  %v2129_v62 = vsub.f32 %v2057_v58, %v8886_v60  ;;  %v1628_v2 = vsub.f32 %v1626_v61, %v1627_v63  ;;  %v2559_v6 = vpop.permute.xlu0 %2558  ;;  %v3062_v7 = vpop.permute.xlu1 %3061 }
  0xa3   :  { %v2560_v8 = vsel %vm43_vm0, %v2559_v6, 0  ;;  %v3063_v9 = vsel %vm43_vm0, %v3062_v7, 0 }
  0xa4   :  { %v1124_v51 = vand.u32 4294901760, %v1123_v49  ;;  %v623_v52 = vand.u32 4294901760, %v622_v50  ;;  %v2130_v1 = vand.u32 4294901760, %v2129_v62  ;;  %v1629_v4 = vand.u32 4294901760, %v1628_v2 }
  0xa5   :  { %v8933_v10 = vand.u32 4294901760, %v2560_v8  ;;  %v8936_v11 = vand.u32 4294901760, %v3063_v9 }
  0xa6   :  { %v1125_v53 = vsub.f32 %v1123_v49, %v1124_v51  ;;  %624 = vmatmul.mubr.f32.vlgmr.msra.gmra.mrb[0].mxu1 %v623_v52  ;;  %v2131_v3 = vsub.f32 %v2129_v62, %v2130_v1 }
  0xa7   :  { %8130 = vmatpush1.bf16.msra.mxu1 %v8803_v36  ;;  %714 = vmatprep.mubr.f32.mxu1 %v8731_v0  ;;  %v2632_v13 = vsub.f32 %v2560_v8, %v8933_v10  ;;  %v3135_v14 = vsub.f32 %v3063_v9, %v8936_v11 }
  0xa8   :  { %v1126_v54 = vand.u32 4294901760, %v1125_v53  ;;  %8132 = vmatprep.subr.bf16.mxu1 %v8801_v35  ;;  %v2132_v5 = vand.u32 4294901760, %v2131_v3  ;;  %v3565_v22 = vpop.permute.xlu0 %3564 }
  0xa9   :  { %v2633_v16 = vand.u32 4294901760, %v2632_v13  ;;  %v3136_v17 = vand.u32 4294901760, %v3135_v14  ;;  %v3566_v23 = vsel %vm43_vm0, %v3565_v22, 0 }
  0xaa   :  { %1127 = vmatmul.mubr.f32.vlgmr.msra.gmra.mrb[2].mxu0 %v1126_v54  ;;  %v8984_v25 = vand.u32 4294901760, %v3566_v23 }
  0xab   :  { %8154 = vmatpush1.bf16.msra.mxu0 %v8803_v36  ;;  %1217 = vmatprep.mubr.f32.mxu0 %v8731_v0  ;;  %v2634_v18 = vsub.f32 %v2632_v13, %v2633_v16  ;;  %v3137_v19 = vsub.f32 %v3135_v14, %v3136_v17 }
  0xac   :  { %8156 = vmatprep.subr.bf16.mxu0 %v8801_v35  ;;  %v8992_v27 = vsub.f32 %v3566_v23, %v8984_v25 }
  0xad   :  { %v2635_v20 = vand.u32 4294901760, %v2634_v18  ;;  %v3138_v21 = vand.u32 4294901760, %v3137_v19 }
  0xae   :  { %716 = vmatmul.mubr.f32.vlgmr.msra.gmra.mrb[0].mxu1 %v8852_v43  ;;  %v3639_v29 = vand.u32 4294901760, %v8992_v27 }
  0xaf   :  { %8134 = vmatpush1.bf16.msra.mxu1 %v8811_v37  ;;  %794 = vmatprep.mubr.f32.mxu1 %v8731_v0 }
  0xb0   :  { %8136 = vmatprep.subr.bf16.mxu1 %v8786_v12  ;;  %v3640_v31 = vsub.f32 %v8992_v27, %v3639_v29 }
  0xb2   :  { %1219 = vmatmul.mubr.f32.vlgmr.msra.gmra.mrb[2].mxu0 %v8856_v48  ;;  %v3641_v33 = vand.u32 4294901760, %v3640_v31 }
  0xb3   :  { %8158 = vmatpush1.bf16.msra.mxu0 %v8811_v37  ;;  %1297 = vmatprep.mubr.f32.mxu0 %v8731_v0 }
  0xb4   :  { %8160 = vmatprep.subr.bf16.mxu0 %v8786_v12 }
  0xb6   :  { %797 = vmatmul.mubr.f32.vlgmr.msra.gmra.mrb[0].mxu1 %v620_v44  ;;  %v4563_v44 = vld [vmem:[#allocation2] sm:$0xff] }
  0xb7   :  { %8138 = vmatpush1.bf16.msra.mxu1 %v8788_v15  ;;  %871 = vmatprep.mubr.f32.mxu1 %v8731_v0  ;;  %v4574_v46 = vand.u32 4294901760, %v4563_v44 }
  0xb8   :  { %8140 = vmatprep.subr.bf16.mxu1 %v8817_v38 }
  0xb9   :  { %v9050_v53 = vsub.f32 %v4563_v44, %v4574_v46 }
  0xba   :  { %1300 = vmatmul.mubr.f32.vlgmr.msra.gmra.mrb[2].mxu0 %v1123_v49 }
  0xbb   :  { %8162 = vmatpush1.bf16.msra.mxu0 %v8788_v15  ;;  %1374 = vmatprep.mubr.f32.mxu0 %v8731_v0  ;;  %v4660_v58 = vand.u32 4294901760, %v9050_v53 }
  0xbc   :  { %8164 = vmatprep.subr.bf16.mxu0 %v8817_v38 }
  0xbe   :  { %875 = vmatmul.mubr.f32.vlgmr.msra.gmra.mrb[0].mxu1 %v621_v47  ;;  %v4578_v47 = vand.u32 4294901760, %v4565_v45 }
  0xbf   :  { %8142 = vmatpush1.bf16.msra.mxu1 %v8822_v39  ;;  %957 = vmatprep.mubr.f32.mxu1 %v8731_v0 }
  0xc0   :  { %8144 = vmatprep.subr.bf16.mxu1 %v8786_v12  ;;  %v9052_v54 = vsub.f32 %v4565_v45, %v4578_v47  ;;  %v9091_v6 = vpack.c.bf16 %v4578_v47, %v4574_v46 }
  0xc2   :  { %1378 = vmatmul.mubr.f32.vlgmr.msra.gmra.mrb[2].mxu0 %v1124_v51 }
  0xc3   :  { %8166 = vmatpush1.bf16.msra.mxu0 %v8822_v39  ;;  %1460 = vmatprep.mubr.f32.mxu0 %v8731_v0 }
  0xc4   :  { %8168 = vmatprep.subr.bf16.mxu0 %v8786_v12 }
  0xc6   :  { %959 = vmatmul.mubr.f32.vlgmr.msra.gmra.mrb[0].mxu1 %v8852_v43 }
  0xc7   :  { %8146 = vmatpush1.bf16.msra.mxu1 %v8788_v15  ;;  %1033 = vmatprep.mubr.f32.mxu1 %v8731_v0 }
  0xc8   :  { %8172 = vmatprep.subr.bf16.mxu1 %v8786_v12 }
  0xca   :  { %1462 = vmatmul.mubr.f32.vlgmr.msra.gmra.mrb[2].mxu0 %v8856_v48 }
  0xcb   :  { %8170 = vmatpush1.bf16.msra.mxu0 %v8788_v15  ;;  %1536 = vmatprep.mubr.f32.mxu0 %v8731_v0 }
  0xcc   :  { %8196 = vmatprep.subr.bf16.mxu0 %v8786_v12 }
  0xce   :  { %1035 = vmatmul.mubr.f32.vlgmr.msra.gmra.mrb[0].mxu1 %v8852_v43 }
  0xcf   :  { %8174 = vmatpush1.bf16.msra.mxu1 %v8788_v15  ;;  %1624 = vmatprep.mubr.f32.mxu1 %v8731_v0 }
  0xd0   :  { %8176 = vmatprep.subr.bf16.mxu1 %v8799_v34 }
  0xd2   :  { %1538 = vmatmul.mubr.f32.vlgmr.msra.gmra.mrb[2].mxu0 %v8856_v48  ;;  %1630 = vmatmul.mubr.f32.vlgmr.msra.gmra.mrb[2].mxu1 %v1629_v4  ;;  %v5072_v48 = vpop.permute.xlu0 %5071 }
  0xd3   :  { %8178 = vmatpush1.bf16.msra.mxu1 %v8803_v36  ;;  %8198 = vmatpush1.bf16.msra.mxu0 %v8788_v15  ;;  %v5073_v52 = vsel %vm43_vm0, %v5072_v48, 0 }
  0xd4   :  { %2127 = vmatprep.mubr.f32.mxu0 %v8731_v0  ;;  %1720 = vmatprep.mubr.f32.mxu1 %v8731_v0  ;;  %v9061_v57 = vand.u32 4294901760, %v5073_v52 }
  0xd5   :  { %8180 = vmatprep.subr.bf16.mxu1 %v8801_v35  ;;  %8200 = vmatprep.subr.bf16.mxu0 %v8799_v34 }
  0xd6   :  { %2133 = vmatmul.mubr.f32.vlgmr.msra.gmra.mrb[4].mxu0 %v2132_v5 }
  0xd7   :  { %8202 = vmatpush1.bf16.msra.mxu0 %v8803_v36  ;;  %2223 = vmatprep.mubr.f32.mxu0 %v8731_v0 }
  0xd8   :  { %8204 = vmatprep.subr.bf16.mxu0 %v8801_v35 }
  0xda   :  { %1722 = vmatmul.mubr.f32.vlgmr.msra.gmra.mrb[2].mxu1 %v8883_v59 }
  0xdb   :  { %8182 = vmatpush1.bf16.msra.mxu1 %v8811_v37  ;;  %1800 = vmatprep.mubr.f32.mxu1 %v8731_v0 }
  0xdc   :  { %8184 = vmatprep.subr.bf16.mxu1 %v8786_v12 }
  0xde   :  { %2225 = vmatmul.mubr.f32.vlgmr.msra.gmra.mrb[4].mxu0 %v8886_v60 }
  0xdf   :  { %8206 = vmatpush1.bf16.msra.mxu0 %v8811_v37  ;;  %2303 = vmatprep.mubr.f32.mxu0 %v8731_v0 }
  0xe0   :  { %8208 = vmatprep.subr.bf16.mxu0 %v8786_v12 }
  0xe2   :  { %1803 = vmatmul.mubr.f32.vlgmr.msra.gmra.mrb[2].mxu1 %v1626_v61 }
  0xe3   :  { %8186 = vmatpush1.bf16.msra.mxu1 %v8788_v15  ;;  %1877 = vmatprep.mubr.f32.mxu1 %v8731_v0 }
  0xe4   :  { %8188 = vmatprep.subr.bf16.mxu1 %v8817_v38 }
  0xe6   :  { %2306 = vmatmul.mubr.f32.vlgmr.msra.gmra.mrb[4].mxu0 %v2129_v62 }
  0xe7   :  { %8210 = vmatpush1.bf16.msra.mxu0 %v8788_v15  ;;  %2380 = vmatprep.mubr.f32.mxu0 %v8731_v0 }
  0xe8   :  { %8212 = vmatprep.subr.bf16.mxu0 %v8817_v38 }
  0xea   :  { %1881 = vmatmul.mubr.f32.vlgmr.msra.gmra.mrb[2].mxu1 %v1627_v63 }
  0xeb   :  { %8190 = vmatpush1.bf16.msra.mxu1 %v8822_v39  ;;  %1963 = vmatprep.mubr.f32.mxu1 %v8731_v0 }
  0xec   :  { %8192 = vmatprep.subr.bf16.mxu1 %v8786_v12 }
  0xee   :  { %2384 = vmatmul.mubr.f32.vlgmr.msra.gmra.mrb[4].mxu0 %v2130_v1  ;;  %v4661_v1 = vsub.f32 %v9050_v53, %v4660_v58 }
  0xef   :  { %8214 = vmatpush1.bf16.msra.mxu0 %v8822_v39  ;;  %2466 = vmatprep.mubr.f32.mxu0 %v8731_v0 }
  0xf0   :  { %8216 = vmatprep.subr.bf16.mxu0 %v8786_v12  ;;  %v4662_v7 = vand.u32 4294901760, %v4661_v1 }
  0xf2   :  { %1965 = vmatmul.mubr.f32.vlgmr.msra.gmra.mrb[2].mxu1 %v8883_v59 }
  0xf3   :  { %8194 = vmatpush1.bf16.msra.mxu1 %v8788_v15  ;;  %2039 = vmatprep.mubr.f32.mxu1 %v8731_v0 }
  0xf4   :  { %8220 = vmatprep.subr.bf16.mxu1 %v8786_v12 }
  0xf6   :  { %2468 = vmatmul.mubr.f32.vlgmr.msra.gmra.mrb[4].mxu0 %v8886_v60 }
  0xf7   :  { %8218 = vmatpush1.bf16.msra.mxu0 %v8788_v15  ;;  %2542 = vmatprep.mubr.f32.mxu0 %v8731_v0 }
  0xf8   :  { %8244 = vmatprep.subr.bf16.mxu0 %v8786_v12 }
  0xfa   :  { %2041 = vmatmul.mubr.f32.vlgmr.msra.gmra.mrb[2].mxu1 %v8883_v59  ;;  %v4672_v59 = vand.u32 4294901760, %v9052_v54 }
  0xfb   :  { %8222 = vmatpush1.bf16.msra.mxu1 %v8788_v15  ;;  %2630 = vmatprep.mubr.f32.mxu1 %v8731_v0 }
  0xfc   :  { %8224 = vmatprep.subr.bf16.mxu1 %v8799_v34 }
  0xfe   :  { %2544 = vmatmul.mubr.f32.vlgmr.msra.gmra.mrb[4].mxu0 %v8886_v60  ;;  %2636 = vmatmul.mubr.f32.vlgmr.msra.gmra.mrb[4].mxu1 %v2635_v20  ;;  %v9143_v20 = vpack.c.bf16 %v4672_v59, %v4660_v58 }
  0xff   :  { %8226 = vmatpush1.bf16.msra.mxu1 %v8803_v36  ;;  %8246 = vmatpush1.bf16.msra.mxu0 %v8788_v15 }
 0x100   :  { %3133 = vmatprep.mubr.f32.mxu0 %v8731_v0  ;;  %2726 = vmatprep.mubr.f32.mxu1 %v8731_v0 }
 0x101   :  { %8228 = vmatprep.subr.bf16.mxu1 %v8801_v35  ;;  %8248 = vmatprep.subr.bf16.mxu0 %v8799_v34 }
 0x102   :  { %3139 = vmatmul.mubr.f32.vlgmr.msra.gmra.mrb[6].mxu0 %v3138_v21  ;;  %v6078_v21 = vpop.permute.xlu0 %6077 }
 0x103   :  { %8250 = vmatpush1.bf16.msra.mxu0 %v8803_v36  ;;  %3229 = vmatprep.mubr.f32.mxu0 %v8731_v0  ;;  %v6079_v23 = vsel %vm43_vm0, %v6078_v21, 0 }
 0x104   :  { %8252 = vmatprep.subr.bf16.mxu0 %v8801_v35 }
 0x106   :  { %2728 = vmatmul.mubr.f32.vlgmr.msra.gmra.mrb[4].mxu1 %v8933_v10 }
 0x107   :  { %8230 = vmatpush1.bf16.msra.mxu1 %v8811_v37  ;;  %2806 = vmatprep.mubr.f32.mxu1 %v8731_v0 }
 0x108   :  { %8232 = vmatprep.subr.bf16.mxu1 %v8786_v12 }
 0x10a   :  { %3231 = vmatmul.mubr.f32.vlgmr.msra.gmra.mrb[6].mxu0 %v8936_v11 }
 0x10b   :  { %8254 = vmatpush1.bf16.msra.mxu0 %v8811_v37  ;;  %3309 = vmatprep.mubr.f32.mxu0 %v8731_v0 }
 0x10c   :  { %8256 = vmatprep.subr.bf16.mxu0 %v8786_v12 }
 0x10e   :  { %2809 = vmatmul.mubr.f32.vlgmr.msra.gmra.mrb[4].mxu1 %v2632_v13 }
 0x10f   :  { %8234 = vmatpush1.bf16.msra.mxu1 %v8788_v15  ;;  %2883 = vmatprep.mubr.f32.mxu1 %v8731_v0 }
 0x110   :  { %8236 = vmatprep.subr.bf16.mxu1 %v8817_v38 }
 0x112   :  { %3312 = vmatmul.mubr.f32.vlgmr.msra.gmra.mrb[6].mxu0 %v3135_v14 }
 0x113   :  { %8258 = vmatpush1.bf16.msra.mxu0 %v8788_v15  ;;  %3386 = vmatprep.mubr.f32.mxu0 %v8731_v0 }
 0x114   :  { %8260 = vmatprep.subr.bf16.mxu0 %v8817_v38 }
 0x116   :  { %2887 = vmatmul.mubr.f32.vlgmr.msra.gmra.mrb[4].mxu1 %v2633_v16 }
 0x117   :  { %8238 = vmatpush1.bf16.msra.mxu1 %v8822_v39  ;;  %2969 = vmatprep.mubr.f32.mxu1 %v8731_v0 }
 0x118   :  { %8240 = vmatprep.subr.bf16.mxu1 %v8786_v12 }
 0x11a   :  { %3390 = vmatmul.mubr.f32.vlgmr.msra.gmra.mrb[6].mxu0 %v3136_v17  ;;  %v9119_v17 = vpack.c.bf16 %v9052_v54, %v9050_v53 }
 0x11b   :  { %8262 = vmatpush1.bf16.msra.mxu0 %v8822_v39  ;;  %3472 = vmatprep.mubr.f32.mxu0 %v8731_v0 }
 0x11c   :  { %8264 = vmatprep.subr.bf16.mxu0 %v8786_v12 }
 0x11e   :  { %2971 = vmatmul.mubr.f32.vlgmr.msra.gmra.mrb[4].mxu1 %v8933_v10 }
 0x11f   :  { %8242 = vmatpush1.bf16.msra.mxu1 %v8788_v15  ;;  %3045 = vmatprep.mubr.f32.mxu1 %v8731_v0 }
 0x120   :  { %8268 = vmatprep.subr.bf16.mxu1 %v8786_v12 }
 0x122   :  { %3474 = vmatmul.mubr.f32.vlgmr.msra.gmra.mrb[6].mxu0 %v8936_v11 }
 0x123   :  { %8266 = vmatpush1.bf16.msra.mxu0 %v8788_v15  ;;  %3548 = vmatprep.mubr.f32.mxu0 %v8731_v0 }
 0x124   :  { %8292 = vmatprep.subr.bf16.mxu0 %v8786_v12 }
 0x126   :  { %3047 = vmatmul.mubr.f32.vlgmr.msra.gmra.mrb[4].mxu1 %v8933_v10 }
 0x127   :  { %8270 = vmatpush1.bf16.msra.mxu1 %v8788_v15  ;;  %3636 = vmatprep.mubr.f32.mxu1 %v8731_v0 }
 0x128   :  { %8272 = vmatprep.subr.bf16.mxu1 %v8799_v34 }
 0x12a   :  { %3550 = vmatmul.mubr.f32.vlgmr.msra.gmra.mrb[6].mxu0 %v8936_v11  ;;  %3642 = vmatmul.mubr.f32.vlgmr.msra.gmra.mrb[6].mxu1 %v3641_v33 }
 0x12b   :  { %8274 = vmatpush1.bf16.msra.mxu1 %v8803_v36  ;;  %8294 = vmatpush1.bf16.msra.mxu0 %v8788_v15 }
 0x12c   :  { %4137 = vmatprep.mubr.f32.mxu0 %v8731_v0  ;;  %3732 = vmatprep.mubr.f32.mxu1 %v8731_v0 }
 0x12d   :  { %8276 = vmatprep.subr.bf16.mxu1 %v8801_v35  ;;  %8296 = vmatprep.subr.bf16.mxu0 %v8799_v34  ;;  %v4564_v34 = vld [vmem:[#allocation2 + $0x8] sm:$0xff] }
 0x12e   :  { %4143 = vmatmul.mubr.f32.vlgmr.msra.gmra.mrb[8].mxu0 %v4142_v40  ;;  %v533_v41 = vpop.f32.mrb[0].mxu0 }
 0x12f   :  { %8298 = vmatpush1.bf16.msra.mxu0 %v8803_v36  ;;  %4233 = vmatprep.mubr.f32.mxu0 %v8731_v0  ;;  %538 = vst [vmem:[#allocation7] sm:$0xff] %v533_v41  ;;  %v535_v42 = vpop.f32.mrb[1].mxu0  ;;  %v4566_v36 = vld [vmem:[#allocation2 + $0x18] sm:$0xff]  ;;  %v7084_v41 = vpop.permute.xlu0 %7083 }
 0x130   :  { %8300 = vmatprep.subr.bf16.mxu0 %v8801_v35  ;;  %539 = vst [vmem:[#allocation7 + $0x8] sm:$0xff] %v535_v42  ;;  %v4572_v35 = vand.u32 4294901760, %v4564_v34  ;;  %v4576_v43 = vand.u32 4294901760, %v4566_v36 }
 0x132   :  { %3734 = vmatmul.mubr.f32.vlgmr.msra.gmra.mrb[6].mxu1 %v8984_v25  ;;  %v9042_v49 = vsub.f32 %v4564_v34, %v4572_v35  ;;  %v9044_v50 = vsub.f32 %v4566_v36, %v4576_v43  ;;  %v9070_v61 = vpack.c.bf16 %v4576_v43, %v4572_v35  ;;  %v7085_v34 = vsel %vm43_vm0, %v7084_v41, 0 }
 0x133   :  { %8278 = vmatpush1.bf16.msra.mxu1 %v8811_v37  ;;  %3812 = vmatprep.mubr.f32.mxu1 %v8731_v0  ;;  %v9205_v35 = vand.u32 4294901760, %v7085_v34 }
 0x134   :  { %8280 = vmatprep.subr.bf16.mxu1 %v8786_v12  ;;  %v4666_v56 = vand.u32 4294901760, %v9044_v50  ;;  %v9108_v14 = vpack.c.bf16 %v9044_v50, %v9042_v49 }
 0x136   :  { %4235 = vmatmul.mubr.f32.vlgmr.msra.gmra.mrb[8].mxu0 %v8987_v26  ;;  %v4667_v63 = vsub.f32 %v9044_v50, %v4666_v56 }
 0x137   :  { %8302 = vmatpush1.bf16.msra.mxu0 %v8811_v37  ;;  %4313 = vmatprep.mubr.f32.mxu0 %v8731_v0  ;;  %v4569_v37 = vpop.permute.xlu1 %4568 }
 0x138   :  { %8304 = vmatprep.subr.bf16.mxu0 %v8786_v12  ;;  %v4570_v51 = vsel %vm43_vm0, %v4569_v37, 0  ;;  %v4668_v4 = vand.u32 4294901760, %v4667_v63  ;;  %v7157_v37 = vsub.f32 %v7085_v34, %v9205_v35 }
 0x139   :  { %v9054_v55 = vand.u32 4294901760, %v4570_v51 }
 0x13a   :  { %3815 = vmatmul.mubr.f32.vlgmr.msra.gmra.mrb[6].mxu1 %v8992_v27  ;;  %v7158_v48 = vand.u32 4294901760, %v7157_v37 }
 0x13b   :  { %8282 = vmatpush1.bf16.msra.mxu1 %v8788_v15  ;;  %3889 = vmatprep.mubr.f32.mxu1 %v8731_v0  ;;  %v9068_v60 = vsub.f32 %v4570_v51, %v9054_v55  ;;  %v5575_v19 = vpop.permute.xlu1 %5574 }
 0x13c   :  { %8284 = vmatprep.subr.bf16.mxu1 %v8817_v38  ;;  %v5576_v22 = vsel %vm43_vm0, %v5575_v19, 0  ;;  %v7159_v51 = vsub.f32 %v7157_v37, %v7158_v48 }
 0x13d   :  { %v4643_v2 = vand.u32 4294901760, %v9068_v60  ;;  %v9152_v24 = vand.u32 4294901760, %v5576_v22 }
 0x13e   :  { %4316 = vmatmul.mubr.f32.vlgmr.msra.gmra.mrb[8].mxu0 %v8997_v28  ;;  %v7160_v53 = vand.u32 4294901760, %v7159_v51 }
 0x13f   :  { %8306 = vmatpush1.bf16.msra.mxu0 %v8788_v15  ;;  %4390 = vmatprep.mubr.f32.mxu0 %v8731_v0  ;;  %v4644_v9 = vsub.f32 %v9068_v60, %v4643_v2  ;;  %v6581_v40 = vpop.permute.xlu1 %6580 }
 0x140   :  { %8308 = vmatprep.subr.bf16.mxu0 %v8817_v38  ;;  %v4654_v38 = vand.u32 4294901760, %v9042_v49  ;;  %v6582_v42 = vsel %vm43_vm0, %v6581_v40, 0 }
 0x141   :  { %v9202_v36 = vand.u32 4294901760, %v6582_v42 }
 0x142   :  { %3893 = vmatmul.mubr.f32.vlgmr.msra.gmra.mrb[6].mxu1 %v3639_v29  ;;  %v4655_v62 = vsub.f32 %v9042_v49, %v4654_v38  ;;  %v9131_v18 = vpack.c.bf16 %v4666_v56, %v4654_v38 }
 0x143   :  { %8286 = vmatpush1.bf16.msra.mxu1 %v8822_v39  ;;  %3975 = vmatprep.mubr.f32.mxu1 %v8731_v0  ;;  %v6654_v43 = vsub.f32 %v6582_v42, %v9202_v36 }
 0x144   :  { %8288 = vmatprep.subr.bf16.mxu1 %v8786_v12  ;;  %v4656_v3 = vand.u32 4294901760, %v4655_v62 }
 0x145   :  { %v6655_v46 = vand.u32 4294901760, %v6654_v43 }
 0x146   :  { %4394 = vmatmul.mubr.f32.vlgmr.msra.gmra.mrb[8].mxu0 %v4140_v30  ;;  %v9096_v10 = vpack.c.bf16 %v4668_v4, %v4656_v3 }
 0x147   :  { %8310 = vmatpush1.bf16.msra.mxu0 %v8822_v39  ;;  %4476 = vmatprep.mubr.f32.mxu0 %v8731_v0  ;;  %v9077_v39 = vsub.f32 %v5073_v52, %v9061_v57  ;;  %v6656_v50 = vsub.f32 %v6654_v43, %v6655_v46 }
 0x148   :  { %8312 = vmatprep.subr.bf16.mxu0 %v8786_v12  ;;  %v4673_v12 = vsub.f32 %v9052_v54, %v4672_v59  ;;  %v7587_v54 = vpop.permute.xlu1 %7586 }
 0x149   :  { %v5146_v5 = vand.u32 4294901760, %v9077_v39  ;;  %v6657_v52 = vand.u32 4294901760, %v6656_v50 }
 0x14a   :  { %3977 = vmatmul.mubr.f32.vlgmr.msra.gmra.mrb[6].mxu1 %v8984_v25  ;;  %v4674_v8 = vand.u32 4294901760, %v4673_v12 }
 0x14b   :  { %8290 = vmatpush1.bf16.msra.mxu1 %v8788_v15  ;;  %4051 = vmatprep.mubr.f32.mxu1 %v8731_v0  ;;  %v5147_v11 = vsub.f32 %v9077_v39, %v5146_v5 }
 0x14c   :  { %8316 = vmatprep.subr.bf16.mxu1 %v9070_v61  ;;  %v9103_v13 = vpack.c.bf16 %v4674_v8, %v4662_v7 }
 0x14d   :  { %v5148_v16 = vand.u32 4294901760, %v5147_v11 }
 0x14e   :  { %4478 = vmatmul.mubr.f32.vlgmr.msra.gmra.mrb[8].mxu0 %v8987_v26 }
 0x14f   :  { %8314 = vmatpush1.bf16.msra.mxu0 %v8788_v15  ;;  %4552 = vmatprep.mubr.f32.mxu0 %v8731_v0  ;;  %v4645_v15 = vand.u32 4294901760, %v4644_v9 }
 0x150   :  { %8340 = vmatprep.subr.bf16.mxu0 %v9070_v61 }
 0x152   :  { %4053 = vmatmul.mubr.f32.vlgmr.msra.gmra.mrb[6].mxu1 %v8984_v25  ;;  %v9155_v25 = vand.u32 4294901760, %v6079_v23 }
 0x153   :  { %8318 = vmatpush1.bf16.msra.mxu1 %v9091_v6  ;;  %4640 = vmatprep.mubr.f32.mxu1 %v8731_v0 }
 0x154   :  { %8320 = vmatprep.subr.bf16.mxu1 %v9096_v10  ;;  %v6151_v27 = vsub.f32 %v6079_v23, %v9155_v25 }
 0x156   :  { %4554 = vmatmul.mubr.f32.vlgmr.msra.gmra.mrb[8].mxu0 %v8987_v26  ;;  %4646 = vmatmul.mubr.f32.vlgmr.msra.gmra.mrb[8].mxu1 %v4645_v15  ;;  %v5648_v26 = vsub.f32 %v5576_v22, %v9152_v24  ;;  %v6152_v29 = vand.u32 4294901760, %v6151_v27 }
 0x157   :  { %8322 = vmatpush1.bf16.msra.mxu1 %v9103_v13  ;;  %8342 = vmatpush1.bf16.msra.mxu0 %v9091_v6 }
 0x158   :  { %5143 = vmatprep.mubr.f32.mxu0 %v8731_v0  ;;  %4736 = vmatprep.mubr.f32.mxu1 %v8731_v0  ;;  %v5649_v28 = vand.u32 4294901760, %v5648_v26  ;;  %v6153_v31 = vsub.f32 %v6151_v27, %v6152_v29 }
 0x159   :  { %8324 = vmatprep.subr.bf16.mxu1 %v9108_v14  ;;  %8344 = vmatprep.subr.bf16.mxu0 %v9096_v10 }
 0x15a   :  { %5149 = vmatmul.mubr.f32.vlgmr.msra.gmra.mrb[10].mxu0 %v5148_v16  ;;  %v5650_v30 = vsub.f32 %v5648_v26, %v5649_v28  ;;  %v6154_v33 = vand.u32 4294901760, %v6153_v31 }
 0x15b   :  { %8346 = vmatpush1.bf16.msra.mxu0 %v9103_v13  ;;  %5239 = vmatprep.mubr.f32.mxu0 %v8731_v0 }
 0x15c   :  { %8348 = vmatprep.subr.bf16.mxu0 %v9108_v14  ;;  %v5651_v32 = vand.u32 4294901760, %v5650_v30 }
 0x15e   :  { %4738 = vmatmul.mubr.f32.vlgmr.msra.gmra.mrb[8].mxu1 %v9054_v55 }
 0x15f   :  { %8326 = vmatpush1.bf16.msra.mxu1 %v9119_v17  ;;  %4816 = vmatprep.mubr.f32.mxu1 %v8731_v0 }
 0x160   :  { %8328 = vmatprep.subr.bf16.mxu1 %v9070_v61 }
 0x162   :  { %5241 = vmatmul.mubr.f32.vlgmr.msra.gmra.mrb[10].mxu0 %v9061_v57 }
 0x163   :  { %8350 = vmatpush1.bf16.msra.mxu0 %v9119_v17  ;;  %5319 = vmatprep.mubr.f32.mxu0 %v8731_v0 }
 0x164   :  { %8352 = vmatprep.subr.bf16.mxu0 %v9070_v61 }
 0x166   :  { %4819 = vmatmul.mubr.f32.vlgmr.msra.gmra.mrb[8].mxu1 %v9068_v60 }
 0x167   :  { %8330 = vmatpush1.bf16.msra.mxu1 %v9091_v6  ;;  %4893 = vmatprep.mubr.f32.mxu1 %v8731_v0 }
 0x168   :  { %8332 = vmatprep.subr.bf16.mxu1 %v9131_v18 }
 0x16a   :  { %5322 = vmatmul.mubr.f32.vlgmr.msra.gmra.mrb[10].mxu0 %v9077_v39 }
 0x16b   :  { %8354 = vmatpush1.bf16.msra.mxu0 %v9091_v6  ;;  %5396 = vmatprep.mubr.f32.mxu0 %v8731_v0 }
 0x16c   :  { %8356 = vmatprep.subr.bf16.mxu0 %v9131_v18 }
 0x16e   :  { %4897 = vmatmul.mubr.f32.vlgmr.msra.gmra.mrb[8].mxu1 %v4643_v2 }
 0x16f   :  { %8334 = vmatpush1.bf16.msra.mxu1 %v9143_v20  ;;  %4979 = vmatprep.mubr.f32.mxu1 %v8731_v0 }
 0x170   :  { %8336 = vmatprep.subr.bf16.mxu1 %v9070_v61 }
 0x172   :  { %5400 = vmatmul.mubr.f32.vlgmr.msra.gmra.mrb[10].mxu0 %v5146_v5 }
 0x173   :  { %8358 = vmatpush1.bf16.msra.mxu0 %v9143_v20  ;;  %5482 = vmatprep.mubr.f32.mxu0 %v8731_v0 }
 0x174   :  { %8360 = vmatprep.subr.bf16.mxu0 %v9070_v61 }
 0x176   :  { %4981 = vmatmul.mubr.f32.vlgmr.msra.gmra.mrb[8].mxu1 %v9054_v55 }
 0x177   :  { %8338 = vmatpush1.bf16.msra.mxu1 %v9091_v6  ;;  %5055 = vmatprep.mubr.f32.mxu1 %v8731_v0 }
 0x178   :  { %8364 = vmatprep.subr.bf16.mxu1 %v9070_v61 }
 0x17a   :  { %5484 = vmatmul.mubr.f32.vlgmr.msra.gmra.mrb[10].mxu0 %v9061_v57 }
 0x17b   :  { %8362 = vmatpush1.bf16.msra.mxu0 %v9091_v6  ;;  %5558 = vmatprep.mubr.f32.mxu0 %v8731_v0 }
 0x17c   :  { %8388 = vmatprep.subr.bf16.mxu0 %v9070_v61 }
 0x17e   :  { %5057 = vmatmul.mubr.f32.vlgmr.msra.gmra.mrb[8].mxu1 %v9054_v55  ;;  %v7588_v55 = vsel %vm43_vm0, %v7587_v54, 0 }
 0x17f   :  { %8366 = vmatpush1.bf16.msra.mxu1 %v9091_v6  ;;  %5646 = vmatprep.mubr.f32.mxu1 %v8731_v0  ;;  %v7659_v38 = vand.u32 4294901760, %v7588_v55 }
 0x180   :  { %8368 = vmatprep.subr.bf16.mxu1 %v9096_v10 }
 0x181   :  { %v7660_v56 = vsub.f32 %v7588_v55, %v7659_v38 }
 0x182   :  { %5560 = vmatmul.mubr.f32.vlgmr.msra.gmra.mrb[10].mxu0 %v9061_v57  ;;  %5652 = vmatmul.mubr.f32.vlgmr.msra.gmra.mrb[10].mxu1 %v5651_v32 }
 0x183   :  { %8370 = vmatpush1.bf16.msra.mxu1 %v9103_v13  ;;  %8390 = vmatpush1.bf16.msra.mxu0 %v9091_v6  ;;  %v7661_v59 = vand.u32 4294901760, %v7660_v56 }
 0x184   :  { %6149 = vmatprep.mubr.f32.mxu0 %v8731_v0  ;;  %5742 = vmatprep.mubr.f32.mxu1 %v8731_v0 }
 0x185   :  { %8372 = vmatprep.subr.bf16.mxu1 %v9108_v14  ;;  %8392 = vmatprep.subr.bf16.mxu0 %v9096_v10  ;;  %v7662_v63 = vsub.f32 %v7660_v56, %v7661_v59 }
 0x186   :  { %6155 = vmatmul.mubr.f32.vlgmr.msra.gmra.mrb[12].mxu0 %v6154_v33 }
 0x187   :  { %8394 = vmatpush1.bf16.msra.mxu0 %v9103_v13  ;;  %6245 = vmatprep.mubr.f32.mxu0 %v8731_v0  ;;  %v7663_v39 = vand.u32 4294901760, %v7662_v63 }
 0x188   :  { %8396 = vmatprep.subr.bf16.mxu0 %v9108_v14 }
 0x18a   :  { %5744 = vmatmul.mubr.f32.vlgmr.msra.gmra.mrb[10].mxu1 %v9152_v24 }
 0x18b   :  { %8374 = vmatpush1.bf16.msra.mxu1 %v9119_v17  ;;  %5822 = vmatprep.mubr.f32.mxu1 %v8731_v0 }
 0x18c   :  { %8376 = vmatprep.subr.bf16.mxu1 %v9070_v61 }
 0x18e   :  { %6247 = vmatmul.mubr.f32.vlgmr.msra.gmra.mrb[12].mxu0 %v9155_v25 }
 0x18f   :  { %8398 = vmatpush1.bf16.msra.mxu0 %v9119_v17  ;;  %6325 = vmatprep.mubr.f32.mxu0 %v8731_v0 }
 0x190   :  { %8400 = vmatprep.subr.bf16.mxu0 %v9070_v61 }
 0x192   :  { %5825 = vmatmul.mubr.f32.vlgmr.msra.gmra.mrb[10].mxu1 %v5648_v26 }
 0x193   :  { %8378 = vmatpush1.bf16.msra.mxu1 %v9091_v6  ;;  %5899 = vmatprep.mubr.f32.mxu1 %v8731_v0 }
 0x194   :  { %8380 = vmatprep.subr.bf16.mxu1 %v9131_v18 }
 0x196   :  { %6328 = vmatmul.mubr.f32.vlgmr.msra.gmra.mrb[12].mxu0 %v6151_v27 }
 0x197   :  { %8402 = vmatpush1.bf16.msra.mxu0 %v9091_v6  ;;  %6402 = vmatprep.mubr.f32.mxu0 %v8731_v0 }
 0x198   :  { %8404 = vmatprep.subr.bf16.mxu0 %v9131_v18 }
 0x19a   :  { %5903 = vmatmul.mubr.f32.vlgmr.msra.gmra.mrb[10].mxu1 %v5649_v28 }
 0x19b   :  { %8382 = vmatpush1.bf16.msra.mxu1 %v9143_v20  ;;  %5985 = vmatprep.mubr.f32.mxu1 %v8731_v0 }
 0x19c   :  { %8384 = vmatprep.subr.bf16.mxu1 %v9070_v61 }
 0x19e   :  { %6406 = vmatmul.mubr.f32.vlgmr.msra.gmra.mrb[12].mxu0 %v6152_v29 }
 0x19f   :  { %8406 = vmatpush1.bf16.msra.mxu0 %v9143_v20  ;;  %6488 = vmatprep.mubr.f32.mxu0 %v8731_v0 }
 0x1a0   :  { %8408 = vmatprep.subr.bf16.mxu0 %v9070_v61 }
 0x1a1   :  { %v1036_v44 = vpop.f32.mrb[0].mxu1 }
 0x1a2   :  { %1041 = vst [vmem:[#allocation7 + $0x10] sm:$0xff] %v1036_v44  ;;  %v1038_v45 = vpop.f32.mrb[1].mxu1  ;;  %5987 = vmatmul.mubr.f32.vlgmr.msra.gmra.mrb[10].mxu1 %v9152_v24 }
 0x1a3   :  { %1042 = vst [vmem:[#allocation7 + $0x18] sm:$0xff] %v1038_v45  ;;  %8386 = vmatpush1.bf16.msra.mxu1 %v9091_v6  ;;  %6061 = vmatprep.mubr.f32.mxu1 %v8731_v0 }
 0x1a4   :  { %8412 = vmatprep.subr.bf16.mxu1 %v9070_v61 }
 0x1a5   :  { %v1539_v47 = vpop.f32.mrb[2].mxu0 }
 0x1a6   :  { %1544 = vst [vmem:[#allocation7 + $0x20] sm:$0xff] %v1539_v47  ;;  %v1541_v49 = vpop.f32.mrb[3].mxu0  ;;  %6490 = vmatmul.mubr.f32.vlgmr.msra.gmra.mrb[12].mxu0 %v9155_v25 }
 0x1a7   :  { %1545 = vst [vmem:[#allocation7 + $0x28] sm:$0xff] %v1541_v49  ;;  %8410 = vmatpush1.bf16.msra.mxu0 %v9091_v6  ;;  %6564 = vmatprep.mubr.f32.mxu0 %v8731_v0 }
 0x1a8   :  { %8436 = vmatprep.subr.bf16.mxu0 %v9070_v61 }
 0x1aa   :  { %6063 = vmatmul.mubr.f32.vlgmr.msra.gmra.mrb[10].mxu1 %v9152_v24 }
 0x1ab   :  { %8414 = vmatpush1.bf16.msra.mxu1 %v9091_v6  ;;  %6652 = vmatprep.mubr.f32.mxu1 %v8731_v0 }
 0x1ac   :  { %8416 = vmatprep.subr.bf16.mxu1 %v9096_v10 }
 0x1ae   :  { %6566 = vmatmul.mubr.f32.vlgmr.msra.gmra.mrb[12].mxu0 %v9155_v25  ;;  %6658 = vmatmul.mubr.f32.vlgmr.msra.gmra.mrb[12].mxu1 %v6657_v52 }
 0x1af   :  { %8418 = vmatpush1.bf16.msra.mxu1 %v9103_v13  ;;  %8438 = vmatpush1.bf16.msra.mxu0 %v9091_v6 }
 0x1b0   :  { %7155 = vmatprep.mubr.f32.mxu0 %v8731_v0  ;;  %6748 = vmatprep.mubr.f32.mxu1 %v8731_v0 }
 0x1b1   :  { %8420 = vmatprep.subr.bf16.mxu1 %v9108_v14  ;;  %8440 = vmatprep.subr.bf16.mxu0 %v9096_v10 }
 0x1b2   :  { %7161 = vmatmul.mubr.f32.vlgmr.msra.gmra.mrb[14].mxu0 %v7160_v53 }
 0x1b3   :  { %8442 = vmatpush1.bf16.msra.mxu0 %v9103_v13  ;;  %7251 = vmatprep.mubr.f32.mxu0 %v8731_v0 }
 0x1b4   :  { %8444 = vmatprep.subr.bf16.mxu0 %v9108_v14 }
 0x1b6   :  { %6750 = vmatmul.mubr.f32.vlgmr.msra.gmra.mrb[12].mxu1 %v9202_v36 }
 0x1b7   :  { %8422 = vmatpush1.bf16.msra.mxu1 %v9119_v17  ;;  %6828 = vmatprep.mubr.f32.mxu1 %v8731_v0 }
 0x1b8   :  { %8424 = vmatprep.subr.bf16.mxu1 %v9070_v61 }
 0x1ba   :  { %7253 = vmatmul.mubr.f32.vlgmr.msra.gmra.mrb[14].mxu0 %v9205_v35 }
 0x1bb   :  { %8446 = vmatpush1.bf16.msra.mxu0 %v9119_v17  ;;  %7331 = vmatprep.mubr.f32.mxu0 %v8731_v0 }
 0x1bc   :  { %8448 = vmatprep.subr.bf16.mxu0 %v9070_v61 }
 0x1be   :  { %6831 = vmatmul.mubr.f32.vlgmr.msra.gmra.mrb[12].mxu1 %v6654_v43 }
 0x1bf   :  { %8426 = vmatpush1.bf16.msra.mxu1 %v9091_v6  ;;  %6905 = vmatprep.mubr.f32.mxu1 %v8731_v0 }
 0x1c0   :  { %8428 = vmatprep.subr.bf16.mxu1 %v9131_v18 }
 0x1c2   :  { %7334 = vmatmul.mubr.f32.vlgmr.msra.gmra.mrb[14].mxu0 %v7157_v37 }
 0x1c3   :  { %8450 = vmatpush1.bf16.msra.mxu0 %v9091_v6  ;;  %7408 = vmatprep.mubr.f32.mxu0 %v8731_v0 }
 0x1c4   :  { %8452 = vmatprep.subr.bf16.mxu0 %v9131_v18 }
 0x1c6   :  { %6909 = vmatmul.mubr.f32.vlgmr.msra.gmra.mrb[12].mxu1 %v6655_v46 }
 0x1c7   :  { %8430 = vmatpush1.bf16.msra.mxu1 %v9143_v20  ;;  %6991 = vmatprep.mubr.f32.mxu1 %v8731_v0 }
 0x1c8   :  { %8432 = vmatprep.subr.bf16.mxu1 %v9070_v61 }
 0x1ca   :  { %7412 = vmatmul.mubr.f32.vlgmr.msra.gmra.mrb[14].mxu0 %v7158_v48 }
 0x1cb   :  { %8454 = vmatpush1.bf16.msra.mxu0 %v9143_v20  ;;  %7494 = vmatprep.mubr.f32.mxu0 %v8731_v0 }
 0x1cc   :  { %8456 = vmatprep.subr.bf16.mxu0 %v9070_v61 }
 0x1cd   :  { %v2042_v57 = vpop.f32.mrb[2].mxu1 }
 0x1ce   :  { %2047 = vst [vmem:[#allocation7 + $0x30] sm:$0xff] %v2042_v57  ;;  %v2044_v58 = vpop.f32.mrb[3].mxu1  ;;  %6993 = vmatmul.mubr.f32.vlgmr.msra.gmra.mrb[12].mxu1 %v9202_v36 }
 0x1cf   :  { %2048 = vst [vmem:[#allocation7 + $0x38] sm:$0xff] %v2044_v58  ;;  %8434 = vmatpush1.bf16.msra.mxu1 %v9091_v6  ;;  %7067 = vmatprep.mubr.f32.mxu1 %v8731_v0 }
 0x1d0   :  { %8460 = vmatprep.subr.bf16.mxu1 %v9070_v61 }
 0x1d1   :  { %v2545_v60 = vpop.f32.mrb[4].mxu0 }
 0x1d2   :  { %2550 = vst [vmem:[#allocation7 + $0x40] sm:$0xff] %v2545_v60  ;;  %v2547_v62 = vpop.f32.mrb[5].mxu0  ;;  %7496 = vmatmul.mubr.f32.vlgmr.msra.gmra.mrb[14].mxu0 %v9205_v35 }
 0x1d3   :  { %2551 = vst [vmem:[#allocation7 + $0x48] sm:$0xff] %v2547_v62  ;;  %8458 = vmatpush1.bf16.msra.mxu0 %v9091_v6  ;;  %7570 = vmatprep.mubr.f32.mxu0 %v8731_v0 }
 0x1d6   :  { %7069 = vmatmul.mubr.f32.vlgmr.msra.gmra.mrb[12].mxu1 %v9202_v36 }
 0x1d7   :  { %8462 = vmatpush1.bf16.msra.mxu1 %v9091_v6  ;;  %7658 = vmatprep.mubr.f32.mxu1 %v8731_v0 }
 0x1d8   :  { %8464 = vmatprep.subr.bf16.mxu1 %v9096_v10 }
 0x1da   :  { %7572 = vmatmul.mubr.f32.vlgmr.msra.gmra.mrb[14].mxu0 %v9205_v35  ;;  %7664 = vmatmul.mubr.f32.vlgmr.msra.gmra.mrb[14].mxu1 %v7663_v39 }
 0x1db   :  { %8466 = vmatpush1.bf16.msra.mxu1 %v9103_v13  ;;  %7754 = vmatprep.mubr.f32.mxu1 %v8731_v0 }
 0x1dc   :  { %8468 = vmatprep.subr.bf16.mxu1 %v9108_v14 }
 0x1e2   :  { %7756 = vmatmul.mubr.f32.vlgmr.msra.gmra.mrb[14].mxu1 %v7659_v38 }
 0x1e3   :  { %8470 = vmatpush1.bf16.msra.mxu1 %v9119_v17  ;;  %7834 = vmatprep.mubr.f32.mxu1 %v8731_v0 }
 0x1e4   :  { %8472 = vmatprep.subr.bf16.mxu1 %v9070_v61 }
 0x1ea   :  { %7837 = vmatmul.mubr.f32.vlgmr.msra.gmra.mrb[14].mxu1 %v7660_v56 }
 0x1eb   :  { %8474 = vmatpush1.bf16.msra.mxu1 %v9091_v6  ;;  %7911 = vmatprep.mubr.f32.mxu1 %v8731_v0 }
 0x1ec   :  { %8476 = vmatprep.subr.bf16.mxu1 %v9131_v18 }
 0x1f2   :  { %7915 = vmatmul.mubr.f32.vlgmr.msra.gmra.mrb[14].mxu1 %v7661_v59 }
 0x1f3   :  { %8478 = vmatpush1.bf16.msra.mxu1 %v9143_v20  ;;  %7997 = vmatprep.mubr.f32.mxu1 %v8731_v0 }
 0x1f4   :  { %8480 = vmatprep.subr.bf16.mxu1 %v9070_v61 }
 0x1f9   :  { %v3048_v1 = vpop.f32.mrb[4].mxu1 }
 0x1fa   :  { %3053 = vst [vmem:[#allocation7 + $0x50] sm:$0xff] %v3048_v1  ;;  %v3050_v12 = vpop.f32.mrb[5].mxu1  ;;  %7999 = vmatmul.mubr.f32.vlgmr.msra.gmra.mrb[14].mxu1 %v7659_v38 }
 0x1fb   :  { %3054 = vst [vmem:[#allocation7 + $0x58] sm:$0xff] %v3050_v12  ;;  %8482 = vmatpush1.bf16.msra.mxu1 %v9091_v6  ;;  %8073 = vmatprep.mubr.f32.mxu1 %v8731_v0 }
 0x1fd   :  { %v3551_v2 = vpop.f32.mrb[6].mxu0 }
 0x1fe   :  { %3556 = vst [vmem:[#allocation7 + $0x60] sm:$0xff] %v3551_v2  ;;  %v3553_v3 = vpop.f32.mrb[7].mxu0 }
 0x1ff   :  { %3557 = vst [vmem:[#allocation7 + $0x68] sm:$0xff] %v3553_v3 }
 0x202   :  { %8075 = vmatmul.mubr.f32.vlgmr.msra.gmra.mrb[14].mxu1 %v7659_v38 }
 0x225   :  { %v4054_v4 = vpop.f32.mrb[6].mxu1 }
 0x226   :  { %4059 = vst [vmem:[#allocation7 + $0x70] sm:$0xff] %v4054_v4  ;;  %v4056_v5 = vpop.f32.mrb[7].mxu1 }
 0x227   :  { %4060 = vst [vmem:[#allocation7 + $0x78] sm:$0xff] %v4056_v5 }
 0x229   :  { %v4555_v7 = vpop.f32.mrb[8].mxu0 }
 0x22a   :  { %4560 = vst [vmem:[#allocation7 + $0x80] sm:$0xff] %v4555_v7  ;;  %v4557_v61 = vpop.f32.mrb[9].mxu0 }
 0x22b   :  { %4561 = vst [vmem:[#allocation7 + $0x88] sm:$0xff] %v4557_v61 }
 0x251   :  { %v5058_v8 = vpop.f32.mrb[8].mxu1 }
 0x252   :  { %5063 = vst [vmem:[#allocation7 + $0x90] sm:$0xff] %v5058_v8  ;;  %v5060_v9 = vpop.f32.mrb[9].mxu1 }
 0x253   :  { %5064 = vst [vmem:[#allocation7 + $0x98] sm:$0xff] %v5060_v9 }
 0x255   :  { %v5561_v6 = vpop.f32.mrb[10].mxu0 }
 0x256   :  { %5566 = vst [vmem:[#allocation7 + $0xa0] sm:$0xff] %v5561_v6  ;;  %v5563_v0 = vpop.f32.mrb[11].mxu0 }
 0x257   :  { %5567 = vst [vmem:[#allocation7 + $0xa8] sm:$0xff] %v5563_v0 }
 0x27d   :  { %v6064_v10 = vpop.f32.mrb[10].mxu1 }
 0x27e   :  { %6069 = vst [vmem:[#allocation7 + $0xb0] sm:$0xff] %v6064_v10  ;;  %v6066_v11 = vpop.f32.mrb[11].mxu1 }
 0x27f   :  { %6070 = vst [vmem:[#allocation7 + $0xb8] sm:$0xff] %v6066_v11 }
 0x281   :  { %v6567_v13 = vpop.f32.mrb[12].mxu0 }
 0x282   :  { %6572 = vst [vmem:[#allocation7 + $0xc0] sm:$0xff] %v6567_v13  ;;  %v6569_v15 = vpop.f32.mrb[13].mxu0 }
 0x283   :  { %6573 = vst [vmem:[#allocation7 + $0xc8] sm:$0xff] %v6569_v15 }
 0x2a9   :  { %v7070_v14 = vpop.f32.mrb[12].mxu1 }
 0x2aa   :  { %7075 = vst [vmem:[#allocation7 + $0xd0] sm:$0xff] %v7070_v14  ;;  %v7072_v16 = vpop.f32.mrb[13].mxu1 }
 0x2ab   :  { %7076 = vst [vmem:[#allocation7 + $0xd8] sm:$0xff] %v7072_v16 }
 0x2ad   :  { %v7573_v17 = vpop.f32.mrb[14].mxu0 }
 0x2ae   :  { %7578 = vst [vmem:[#allocation7 + $0xe0] sm:$0xff] %v7573_v17  ;;  %v7575_v18 = vpop.f32.mrb[15].mxu0 }
 0x2af   :  { %7579 = vst [vmem:[#allocation7 + $0xe8] sm:$0xff] %v7575_v18 }
 0x2d5   :  { %v8076_v19 = vpop.f32.mrb[14].mxu1 }
 0x2d6   :  { %8081 = vst [vmem:[#allocation7 + $0xf0] sm:$0xff] %v8076_v19  ;;  %v8078_v20 = vpop.f32.mrb[15].mxu1 }
 0x2d7   :  { %8082 = vst [vmem:[#allocation7 + $0xf8] sm:$0xff] %v8078_v20 }
 0x2d8   :  { %8710 = shalt.err (!%p8707_p6)
}
 0x2d9   :  { %s8711_s16 = scalar_lea.hbm %s9295_s2, 4096 }
 0x2da   :  { %p8712_p7 = scmp.ne.s32.totalorder %s9295_s2, %s8711_s16  ;;  %p8715_p8 = scmp.lt.u32.totalorder %s8711_s16, %s9295_s2 }
 0x2dc   :  { %p8717_p9 = pnand %p8715_p8, %p8712_p7 }
 0x2de   :  { %8720 = shalt.err (!%p8717_p9)
}
 0x2df   :  { %8092 = dma.vmem_to_hbm [thread:$0]  %s8090_s12, 4096, %s9295_s2, [#allocation4]  }
 0x2e0   :  { %8725 = dma.done.wait [#allocation4], 4096  }
 0x2e1   :  { %8726 = vsyncadd [#allocation4], 4294963200 }
 0x2e2   :  { %8096 = vsyncpa [#allocation3], 1 }
 0x2e3   :  { %8097 = vsyncpa [#allocation6], 1 }
 0x2e4   :  { %8098 = vsyncpa [#allocation4], 1 }

</bundles_post_ra>
